<compile_context>
chip_gen: v5e
topology: v5e:2x2
jax: 0.10.0
libtpu: 0.0.40
codegen_flags: <defaults>
</compile_context>

<pallas_src>
import math

import jax
import jax.numpy as jnp
import numpy as np
from jax.experimental import pallas as pl
from jax.experimental.pallas import tpu as pltpu

# ---- static problem geometry (from the PyTorch module) ----
C, H, W = 4, 8, 8          # input channels / spatial
PH, PW = 4, 4              # pooled spatial (maxpool 3/2/1 on 8x8 -> 4x4)
KH, KW = 5, 5              # conv-transpose kernel
NTAP = 9                   # 3x3 maxpool taps
NIN = C * H * W            # 256  flattened input per sample
NOUT = PH * PW             # 16   flattened output per sample
NPOOL = C * NOUT           # 64   flattened pooled per sample (per tap group)
LANE = 128                 # TPU lane width
MAX_TB = 512               # max batch tile (lanes)


# ---------------------------------------------------------------------------
# Module-level constants (built once, shape-only; no weights involved)
# ---------------------------------------------------------------------------
def _build_pool_gather_T():
    """G^T (576,256): row = tap*64 + c*16 + (i*4+j), col = c*64 + ih*8 + iw.

    Out-of-bounds taps (maxpool padding=1, conceptually -inf) are redirected to
    the always-in-bounds centre tap element x[c, 2i, 2j]; duplicating an
    in-window value leaves the max unchanged, so no mask operand is needed.
    """
    g = np.zeros((NTAP * NPOOL, NIN), np.float32)
    for di in range(3):
        for dj in range(3):
            t = di * 3 + dj
            for c in range(C):
                for i in range(PH):
                    for j in range(PW):
                        row = t * NPOOL + c * NOUT + i * PW + j
                        ih, iw = 2 * i - 1 + di, 2 * j - 1 + dj
                        if not (0 <= ih < H and 0 <= iw < W):
                            ih, iw = 2 * i, 2 * j   # centre tap (always valid)
                        g[row, c * H * W + ih * W + iw] = 1.0
    return g


def _build_convT_scatter():
    """T[k, q, p]: kT[p, c*16+q] = sum_k weight[c,0,k//5,k%5] * T[k, q, p]."""
    t = np.zeros((KH * KW, NOUT, NOUT), np.float32)
    for ih in range(PH):
        for iw in range(PW):
            q = ih * PW + iw
            for kh in range(KH):
                for kw in range(KW):
                    oh, ow = ih + kh - 2, iw + kw - 2
                    if 0 <= oh < PH and 0 <= ow < PW:
                        t[kh * KW + kw, q, oh * PW + ow] += 1.0
    return t


_GT_CONST = jnp.asarray(_build_pool_gather_T())      # (576, 256) f32
_T_CONST = jnp.asarray(_build_convT_scatter())       # (25, 16, 16) f32


# ---------------------------------------------------------------------------
# Kernel
# ---------------------------------------------------------------------------
def _erf(x):
    # Abramowitz-Stegun 7.1.26 rational approximation (max abs err ~1.5e-7).
    # Reciprocal goes to the EUP (approx) + one Newton step -> f32 accuracy.
    # TODO(synk): switch to native erf if/when Mosaic exposes a lax.erf lowering.
    a1, a2, a3, a4, a5 = 0.254829592, -0.284496736, 1.421413741, -1.453152027, 1.061405429
    p = 0.3275911
    sgn = jnp.where(x >= 0.0, 1.0, -1.0)
    ax = jnp.abs(x)
    d = 1.0 + p * ax
    t = pl.reciprocal(d, approx=True)
    t = t * (2.0 - d * t)            # one Newton refinement step
    poly = ((((a5 * t + a4) * t + a3) * t + a2) * t + a1) * t
    return sgn * (1.0 - poly * jnp.exp(-ax * ax))


def fused_kernel(xT_ref, gT_ref, kT_ref, b_ref, oT_ref):
    # xT_ref: (256, TB)   gT_ref: (576, 256)   kT_ref: (16, 64)
    # b_ref : (1, 1) SMEM scalar bias          oT_ref: (16, TB)
    # Batch is on the LANE axis everywhere -> dense vregs and unmasked stores.

    # --- MaxPool2d(3, s=2, p=1): one gather matmul, max over 9 tap groups ---
    taps = jnp.dot(gT_ref[...], xT_ref[...], preferred_element_type=jnp.float32)
    pooled = taps[0:NPOOL, :]
    for t in range(1, NTAP):                       # static unroll; VPU maxes on
        pooled = jnp.maximum(pooled, taps[t * NPOOL:(t + 1) * NPOOL, :])

    # --- ConvTranspose2d(4,1,5,s=1,p=2) as one (16,64)@(64,TB) matmul ---
    v2 = jnp.dot(kT_ref[...], pooled, preferred_element_type=jnp.float32) + b_ref[0, 0]

    # --- exact GELU: 0.5 * v2 * (erf(v2 / sqrt(2)) + 1) --- (lane-dense)
    oT_ref[...] = (v2 * 0.5) * (_erf(v2 * 0.7071067811865476) + 1.0)


# ---------------------------------------------------------------------------
# Jitted wrapper (no per-call host work; TB chosen from static batch size)
# ---------------------------------------------------------------------------
@jax.jit
def model_forward(x1, weight, bias):
    """x1: (B,4,8,8), weight: (4,1,5,5), bias: (1,) -> (B,1,4,4)"""
    B = x1.shape[0]

    # Adaptive batch tile: pad batch to a lane multiple, then pick the largest
    # tile <= 512 that divides it AND leaves >=2 grid steps (keeps both v7x
    # TensorCores busy); tiny batches fall back to a single full tile.
    B_pad = ((B + LANE - 1) // LANE) * LANE
    TB = B_pad
    for cand in (MAX_TB, 256, LANE):
        if cand * 2 <= B_pad and B_pad % cand == 0:
            TB = cand
            break

    x2d = x1.reshape(B, NIN).astype(jnp.float32)
    if B_pad != B:
        x2d = jnp.pad(x2d, ((0, B_pad - B), (0, 0)))
    xT = jnp.transpose(x2d)                         # (256, B_pad): batch -> lanes

    # ConvT weight -> (16,64) linear map (kT[p, c*16+q]), built on device.
    kT = jnp.einsum(
        "ck,kqp->pcq",
        weight.reshape(C, KH * KW).astype(jnp.float32),
        _T_CONST,
    ).reshape(NOUT, NPOOL)
    b_smem = bias.astype(jnp.float32).reshape(1, 1)

    flops = 2 * B_pad * (NIN * NTAP * NPOOL + NPOOL * NOUT) + 12 * B_pad * NOUT
    bytes_accessed = 4 * (B_pad * (NIN + NOUT) + NTAP * NPOOL * NIN + NOUT * NPOOL + 1)

    outT = pl.pallas_call(
        fused_kernel,
        out_shape=jax.ShapeDtypeStruct((NOUT, B_pad), jnp.float32),
        grid=(B_pad // TB,),
        in_specs=[
            pl.BlockSpec((NIN, TB), lambda b: (0, b)),             # x tiles (lanes=batch)
            pl.BlockSpec((NTAP * NPOOL, NIN), lambda b: (0, 0)),   # gather matrix (resident)
            pl.BlockSpec((NOUT, NPOOL), lambda b: (0, 0)),         # convT map (resident)
            pl.BlockSpec(memory_space=pltpu.MemorySpace.SMEM),     # scalar bias
        ],
        out_specs=pl.BlockSpec((NOUT, TB), lambda b: (0, b)),
        compiler_params=pltpu.CompilerParams(dimension_semantics=("parallel",)),
        cost_estimate=pl.CostEstimate(
            flops=flops, transcendentals=2 * B_pad * NOUT, bytes_accessed=bytes_accessed),
    )(xT, _GT_CONST, kT, b_smem)

    return jnp.transpose(outT[:, :B]).reshape(B, 1, PH, PW)


# ---------------------------------------------------------------------------
# Independent (vectorized) numpy reference following the PyTorch definitions
# ---------------------------------------------------------------------------
def reference(x1, weight, bias):
    x = np.asarray(x1, np.float64)                       # (B,4,8,8)
    B = x.shape[0]
    xp = np.full((B, C, H + 2, W + 2), -np.inf, np.float64)
    xp[:, :, 1:H + 1, 1:W + 1] = x
    pooled = np.empty((B, C, PH, PW), np.float64)
    for i in range(PH):
        for j in range(PW):
            pooled[:, :, i, j] = xp[:, :, 2 * i:2 * i + 3, 2 * j:2 * j + 3].max(axis=(2, 3))
    w = np.asarray(weight, np.float64)                   # (4,1,5,5)
    out = np.full((B, PH, PW), float(np.asarray(bias).reshape(-1)[0]), np.float64)
    for ih in range(PH):
        for iw in range(PW):
            for kh in range(KH):
                for kw in range(KW):
                    oh, ow = ih + kh - 2, iw + kw - 2
                    if 0 <= oh < PH and 0 <= ow < PW:
                        out[:, oh, ow] += pooled[:, :, ih, iw] @ w[:, 0, kh, kw]
    erf_v = np.vectorize(math.erf)(out * 0.7071067811865476)
    res = (out * 0.5) * (erf_v + 1.0)
    return res.reshape(B, 1, PH, PW)


if __name__ == "__main__":
    key = jax.random.PRNGKey(0)
    k1, k2, k3 = jax.random.split(key, 3)
    weight = jax.random.normal(k2, (4, 1, 5, 5), dtype=jnp.float32) * 0.2
    bias = jax.random.normal(k3, (1,), dtype=jnp.float32) * 0.1

    # small spec-like batch (single tile path)
    x_small = jax.random.normal(k1, (2, 4, 8, 8), dtype=jnp.float32)
    out_small = jax.block_until_ready(model_forward(x_small, weight, bias))
    ref_small = reference(x_small, weight, bias)
    err = float(np.max(np.abs(np.asarray(out_small, np.float64) - ref_small)))
    if not np.allclose(np.asarray(out_small), ref_small, atol=3e-5, rtol=3e-5):
        raise AssertionError(f"Pallas kernel mismatch vs reference, max abs err={err}")

    # larger batch exercising multiple grid steps (pads 600 -> 640 lanes, TB=128, 5 steps)
    x_big = jax.random.normal(jax.random.PRNGKey(1), (600, 4, 8, 8), dtype=jnp.float32)
    out_big = jax.block_until_ready(model_forward(x_big, weight, bias))
    ref_big = reference(x_big, weight, bias)
    if not np.allclose(np.asarray(out_big), ref_big, atol=3e-5, rtol=3e-5):
        raise AssertionError("Pallas kernel mismatch on batched input")

    print("KERNEL_OK")
</pallas_src>

<mosaic_0001>
module attributes {stable_mosaic.version = 11 : i64} {
  func.func @fused_kernel(%arg0: i32, %arg1: memref<256x128xf32, #tpu.memory_space<vmem>>, %arg2: memref<576x256xf32, #tpu.memory_space<vmem>>, %arg3: memref<16x64xf32, #tpu.memory_space<vmem>>, %arg4: memref<1x1xf32, #tpu.memory_space<smem>>, %arg5: memref<16x128xf32, #tpu.memory_space<vmem>>) attributes {dimension_semantics = [#tpu.dimension_semantics<parallel>], iteration_bounds = array<i64: 1>, scalar_prefetch = 0 : i64, scratch_operands = 0 : i64, tpu.core_type = #tpu.core_type<tc>, window_params = [{transform_indices = @transform_0, window_bounds = array<i64: 256, 128>}, {pipeline_mode = #tpu.pipeline_mode<synchronous>, transform_indices = @transform_1, window_bounds = array<i64: 576, 256>}, {pipeline_mode = #tpu.pipeline_mode<synchronous>, transform_indices = @transform_2, window_bounds = array<i64: 16, 64>}, {transform_indices = @transform_3, window_bounds = array<i64: 1, 1>}, {transform_indices = @transform_4, window_bounds = array<i64: 16, 128>}]} {
    %c0 = arith.constant 0 : index
    %c0_0 = arith.constant 0 : index
    %0 = vector.load %arg2[%c0, %c0_0] : memref<576x256xf32, #tpu.memory_space<vmem>>, vector<576x256xf32>
    %c0_1 = arith.constant 0 : index
    %c0_2 = arith.constant 0 : index
    %1 = vector.load %arg1[%c0_1, %c0_2] : memref<256x128xf32, #tpu.memory_space<vmem>>, vector<256x128xf32>
    %cst = arith.constant dense<0.000000e+00> : vector<576x128xf32>
    %2 = tpu.matmul %0, %1, %cst {dimension_numbers = #tpu.dot_dimension_numbers<[1], [0], [0], [1], [0, 0, 1, 1], [], []>} : vector<576x256xf32>, vector<256x128xf32>, vector<576x128xf32> -> vector<576x128xf32>
    %3 = vector.extract_strided_slice %2 {offsets = [0, 0], sizes = [64, 128], strides = [1, 1]} : vector<576x128xf32> to vector<64x128xf32>
    %4 = vector.extract_strided_slice %2 {offsets = [64, 0], sizes = [64, 128], strides = [1, 1]} : vector<576x128xf32> to vector<64x128xf32>
    %5 = arith.maximumf %3, %4 : vector<64x128xf32>
    %6 = vector.extract_strided_slice %2 {offsets = [128, 0], sizes = [64, 128], strides = [1, 1]} : vector<576x128xf32> to vector<64x128xf32>
    %7 = arith.maximumf %5, %6 : vector<64x128xf32>
    %8 = vector.extract_strided_slice %2 {offsets = [192, 0], sizes = [64, 128], strides = [1, 1]} : vector<576x128xf32> to vector<64x128xf32>
    %9 = arith.maximumf %7, %8 : vector<64x128xf32>
    %10 = vector.extract_strided_slice %2 {offsets = [256, 0], sizes = [64, 128], strides = [1, 1]} : vector<576x128xf32> to vector<64x128xf32>
    %11 = arith.maximumf %9, %10 : vector<64x128xf32>
    %12 = vector.extract_strided_slice %2 {offsets = [320, 0], sizes = [64, 128], strides = [1, 1]} : vector<576x128xf32> to vector<64x128xf32>
    %13 = arith.maximumf %11, %12 : vector<64x128xf32>
    %14 = vector.extract_strided_slice %2 {offsets = [384, 0], sizes = [64, 128], strides = [1, 1]} : vector<576x128xf32> to vector<64x128xf32>
    %15 = arith.maximumf %13, %14 : vector<64x128xf32>
    %16 = vector.extract_strided_slice %2 {offsets = [448, 0], sizes = [64, 128], strides = [1, 1]} : vector<576x128xf32> to vector<64x128xf32>
    %17 = arith.maximumf %15, %16 : vector<64x128xf32>
    %18 = vector.extract_strided_slice %2 {offsets = [512, 0], sizes = [64, 128], strides = [1, 1]} : vector<576x128xf32> to vector<64x128xf32>
    %19 = arith.maximumf %17, %18 : vector<64x128xf32>
    %c0_3 = arith.constant 0 : index
    %c0_4 = arith.constant 0 : index
    %20 = vector.load %arg3[%c0_3, %c0_4] : memref<16x64xf32, #tpu.memory_space<vmem>>, vector<16x64xf32>
    %cst_5 = arith.constant dense<0.000000e+00> : vector<16x128xf32>
    %21 = tpu.matmul %20, %19, %cst_5 {dimension_numbers = #tpu.dot_dimension_numbers<[1], [0], [0], [1], [0, 0, 1, 1], [], []>} : vector<16x64xf32>, vector<64x128xf32>, vector<16x128xf32> -> vector<16x128xf32>
    %c0_6 = arith.constant 0 : index
    %c0_7 = arith.constant 0 : index
    %22 = memref.load %arg4[%c0_6, %c0_7] : memref<1x1xf32, #tpu.memory_space<smem>>
    %23 = vector.broadcast %22 : f32 to vector<16x128xf32>
    %24 = arith.addf %21, %23 : vector<16x128xf32>
    %cst_8 = arith.constant 5.000000e-01 : f32
    %25 = vector.broadcast %cst_8 : f32 to vector<16x128xf32>
    %26 = arith.mulf %24, %25 : vector<16x128xf32>
    %cst_9 = arith.constant 0.707106769 : f32
    %27 = vector.broadcast %cst_9 : f32 to vector<16x128xf32>
    %28 = arith.mulf %24, %27 : vector<16x128xf32>
    %cst_10 = arith.constant 0.000000e+00 : f32
    %29 = vector.broadcast %cst_10 : f32 to vector<16x128xf32>
    %30 = arith.cmpf oge, %28, %29 : vector<16x128xf32>
    %cst_11 = arith.constant 1.000000e+00 : f32
    %cst_12 = arith.constant -1.000000e+00 : f32
    %31 = vector.broadcast %cst_11 : f32 to vector<16x128xf32>
    %32 = vector.broadcast %cst_12 : f32 to vector<16x128xf32>
    %33 = arith.select %30, %31, %32 : vector<16x128xi1>, vector<16x128xf32>
    %34 = math.absf %28 : vector<16x128xf32>
    %cst_13 = arith.constant 0.327591091 : f32
    %35 = vector.broadcast %cst_13 : f32 to vector<16x128xf32>
    %36 = arith.mulf %35, %34 : vector<16x128xf32>
    %cst_14 = arith.constant 1.000000e+00 : f32
    %37 = vector.broadcast %cst_14 : f32 to vector<16x128xf32>
    %38 = arith.addf %37, %36 : vector<16x128xf32>
    %39 = tpu.reciprocal %38 {approx = true} : vector<16x128xf32> -> vector<16x128xf32>
    %40 = arith.mulf %38, %39 : vector<16x128xf32>
    %cst_15 = arith.constant 2.000000e+00 : f32
    %41 = vector.broadcast %cst_15 : f32 to vector<16x128xf32>
    %42 = arith.subf %41, %40 : vector<16x128xf32>
    %43 = arith.mulf %39, %42 : vector<16x128xf32>
    %cst_16 = arith.constant 1.06140542 : f32
    %44 = vector.broadcast %cst_16 : f32 to vector<16x128xf32>
    %45 = arith.mulf %44, %43 : vector<16x128xf32>
    %cst_17 = arith.constant -1.45315206 : f32
    %46 = vector.broadcast %cst_17 : f32 to vector<16x128xf32>
    %47 = arith.addf %45, %46 : vector<16x128xf32>
    %48 = arith.mulf %47, %43 : vector<16x128xf32>
    %cst_18 = arith.constant 1.42141378 : f32
    %49 = vector.broadcast %cst_18 : f32 to vector<16x128xf32>
    %50 = arith.addf %48, %49 : vector<16x128xf32>
    %51 = arith.mulf %50, %43 : vector<16x128xf32>
    %cst_19 = arith.constant -0.284496725 : f32
    %52 = vector.broadcast %cst_19 : f32 to vector<16x128xf32>
    %53 = arith.addf %51, %52 : vector<16x128xf32>
    %54 = arith.mulf %53, %43 : vector<16x128xf32>
    %cst_20 = arith.constant 0.254829586 : f32
    %55 = vector.broadcast %cst_20 : f32 to vector<16x128xf32>
    %56 = arith.addf %54, %55 : vector<16x128xf32>
    %57 = arith.mulf %56, %43 : vector<16x128xf32>
    %cst_21 = arith.constant 0.000000e+00 : f32
    %58 = vector.broadcast %cst_21 : f32 to vector<16x128xf32>
    %59 = arith.subf %58, %34 : vector<16x128xf32>
    %60 = arith.mulf %59, %34 : vector<16x128xf32>
    %61 = math.exp %60 : vector<16x128xf32>
    %62 = arith.mulf %57, %61 : vector<16x128xf32>
    %cst_22 = arith.constant 1.000000e+00 : f32
    %63 = vector.broadcast %cst_22 : f32 to vector<16x128xf32>
    %64 = arith.subf %63, %62 : vector<16x128xf32>
    %65 = arith.mulf %33, %64 : vector<16x128xf32>
    %cst_23 = arith.constant 1.000000e+00 : f32
    %66 = vector.broadcast %cst_23 : f32 to vector<16x128xf32>
    %67 = arith.addf %65, %66 : vector<16x128xf32>
    %68 = arith.mulf %26, %67 : vector<16x128xf32>
    %c0_24 = arith.constant 0 : index
    %c0_25 = arith.constant 0 : index
    %69 = vector.load %arg5[%c0_24, %c0_25] : memref<16x128xf32, #tpu.memory_space<vmem>>, vector<16x128xf32>
    tpu.vector_store %arg5[%c0_24, %c0_25], %68 {strides = array<i32>} : memref<16x128xf32, #tpu.memory_space<vmem>>, vector<16x128xf32>,
    return
  }
  func.func @transform_0(%arg0: i32) -> (i32, i32) {
    %c0_i32 = arith.constant 0 : i32
    %c0_i32_0 = arith.constant 0 : i32
    return %c0_i32, %arg0 : i32, i32
  }
  func.func @transform_1(%arg0: i32) -> (i32, i32) {
    %c0_i32 = arith.constant 0 : i32
    %c0_i32_0 = arith.constant 0 : i32
    %c0_i32_1 = arith.constant 0 : i32
    return %c0_i32, %c0_i32_0 : i32, i32
  }
  func.func @transform_2(%arg0: i32) -> (i32, i32) {
    %c0_i32 = arith.constant 0 : i32
    %c0_i32_0 = arith.constant 0 : i32
    %c0_i32_1 = arith.constant 0 : i32
    return %c0_i32, %c0_i32_0 : i32, i32
  }
  func.func @transform_3(%arg0: i32) -> (i32, i32) {
    %c0_i32 = arith.constant 0 : i32
    %c0_i32_0 = arith.constant 0 : i32
    %c0_i32_1 = arith.constant 0 : i32
    return %c0_i32, %c0_i32_0 : i32, i32
  }
  func.func @transform_4(%arg0: i32) -> (i32, i32) {
    %c0_i32 = arith.constant 0 : i32
    %c0_i32_0 = arith.constant 0 : i32
    return %c0_i32, %arg0 : i32, i32
  }
}

</mosaic_0001>

<bundles_post_ra>
// kernel: model_forward.1
= control target key start
LH: loop header
LB: loop body
LE: loop exit
PB: predicated region body
PF: predicated region fallthrough
CT: control target
= control target key end

     0   :  { %vm728_vm0 = vcmask 523264   ;;  %s1698_s0 = inlined_call_operand.vmem [shape: f32[256,128], index: 0, kind: input, shape index: {}]   ;;  %s1699_s1 = inlined_call_operand.vmem [shape: f32[576,256], index: 1, kind: input, shape index: {}]   ;;  %s1700_s2 = inlined_call_operand.vmem [shape: f32[16,64], index: 2, kind: input, shape index: {}]   ;;  %s1701_s3 = inlined_call_operand.<no memory space> [shape: f32[1,1], index: 3, kind: input, shape index: {}]   ;;  %s1702_s4 = inlined_call_operand.vmem [shape: f32[16,128], index: 4, kind: output, shape index: {}]  }
   0x1   :  { %v177_v0 = vld [vmem:[%s1698_s0 + $0x78] sm:$0xff]  ;;  %v176_v2 = vld [vmem:[%s1698_s0 + $0x70] sm:$0xff]  ;;  %v175_v4 = vld [vmem:[%s1698_s0 + $0x68] sm:$0xff] }
   0x2   :  { %v193_v1 = vld [vmem:[%s1698_s0 + $0xf8] sm:$0xff]  ;;  %194 = vmatpush.msra.mxu0 %v177_v0  ;;  %824 = vmatpush.msra.mxu3 %v177_v0  ;;  %v192_v3 = vld [vmem:[%s1698_s0 + $0xf0] sm:$0xff]  ;;  %v191_v5 = vld [vmem:[%s1698_s0 + $0xe8] sm:$0xff] }
   0x3   :  { %427 = vmatpush.msra.mxu1 %v193_v1  ;;  %840 = vmatpush.msra.mxu2 %v193_v1  ;;  %v174_v6 = vld [vmem:[%s1698_s0 + $0x60] sm:$0xff]  ;;  %v173_v8 = vld [vmem:[%s1698_s0 + $0x58] sm:$0xff]  ;;  %v172_v10 = vld [vmem:[%s1698_s0 + $0x50] sm:$0xff] }
   0x4   :  { %195 = vmatpush.msra.mxu0 %v176_v2  ;;  %825 = vmatpush.msra.mxu3 %v176_v2  ;;  %v190_v7 = vld [vmem:[%s1698_s0 + $0xe0] sm:$0xff]  ;;  %v189_v9 = vld [vmem:[%s1698_s0 + $0xd8] sm:$0xff]  ;;  %v188_v11 = vld [vmem:[%s1698_s0 + $0xd0] sm:$0xff] }
   0x5   :  { %428 = vmatpush.msra.mxu1 %v192_v3  ;;  %841 = vmatpush.msra.mxu2 %v192_v3  ;;  %v171_v12 = vld [vmem:[%s1698_s0 + $0x48] sm:$0xff]  ;;  %v170_v14 = vld [vmem:[%s1698_s0 + $0x40] sm:$0xff]  ;;  %v169_v16 = vld [vmem:[%s1698_s0 + $0x38] sm:$0xff] }
   0x6   :  { %196 = vmatpush.msra.mxu0 %v175_v4  ;;  %826 = vmatpush.msra.mxu3 %v175_v4  ;;  %v187_v13 = vld [vmem:[%s1698_s0 + $0xc8] sm:$0xff]  ;;  %v186_v15 = vld [vmem:[%s1698_s0 + $0xc0] sm:$0xff]  ;;  %v185_v17 = vld [vmem:[%s1698_s0 + $0xb8] sm:$0xff] }
   0x7   :  { %429 = vmatpush.msra.mxu1 %v191_v5  ;;  %842 = vmatpush.msra.mxu2 %v191_v5  ;;  %v168_v18 = vld [vmem:[%s1698_s0 + $0x30] sm:$0xff]  ;;  %v167_v20 = vld [vmem:[%s1698_s0 + $0x28] sm:$0xff]  ;;  %v166_v22 = vld [vmem:[%s1698_s0 + $0x20] sm:$0xff] }
   0x8   :  { %197 = vmatpush.msra.mxu0 %v174_v6  ;;  %827 = vmatpush.msra.mxu3 %v174_v6  ;;  %v184_v19 = vld [vmem:[%s1698_s0 + $0xb0] sm:$0xff]  ;;  %v183_v21 = vld [vmem:[%s1698_s0 + $0xa8] sm:$0xff]  ;;  %v182_v23 = vld [vmem:[%s1698_s0 + $0xa0] sm:$0xff] }
   0x9   :  { %430 = vmatpush.msra.mxu1 %v190_v7  ;;  %843 = vmatpush.msra.mxu2 %v190_v7  ;;  %v165_v24 = vld [vmem:[%s1698_s0 + $0x18] sm:$0xff]  ;;  %v164_v26 = vld [vmem:[%s1698_s0 + $0x10] sm:$0xff]  ;;  %v163_v28 = vld [vmem:[%s1698_s0 + $0x8] sm:$0xff] }
   0xa   :  { %198 = vmatpush.msra.mxu0 %v173_v8  ;;  %828 = vmatpush.msra.mxu3 %v173_v8  ;;  %v181_v25 = vld [vmem:[%s1698_s0 + $0x98] sm:$0xff]  ;;  %v180_v27 = vld [vmem:[%s1698_s0 + $0x90] sm:$0xff]  ;;  %v179_v29 = vld [vmem:[%s1698_s0 + $0x88] sm:$0xff] }
   0xb   :  { %431 = vmatpush.msra.mxu1 %v189_v9  ;;  %844 = vmatpush.msra.mxu2 %v189_v9  ;;  %v162_v30 = vld [vmem:[%s1698_s0] sm:$0xff]  ;;  %v19_v34 = vld [vmem:[%s1699_s1 + $0x8] sm:$0xff]  ;;  %v93_v35 = vld [vmem:[%s1699_s1 + $0x258] sm:$0xff] }
   0xc   :  { %199 = vmatpush.msra.mxu0 %v172_v10  ;;  %829 = vmatpush.msra.mxu3 %v172_v10  ;;  %v178_v31 = vld [vmem:[%s1698_s0 + $0x80] sm:$0xff]  ;;  %v20_v36 = vld [vmem:[%s1699_s1 + $0x10] sm:$0xff]  ;;  %v21_v38 = vld [vmem:[%s1699_s1 + $0x18] sm:$0xff] }
   0xd   :  { %432 = vmatpush.msra.mxu1 %v188_v11  ;;  %845 = vmatpush.msra.mxu2 %v188_v11  ;;  %v18_v32 = vld [vmem:[%s1699_s1] sm:$0xff]  ;;  %v92_v37 = vld [vmem:[%s1699_s1 + $0x250] sm:$0xff]  ;;  %v95_v39 = vld [vmem:[%s1699_s1 + $0x268] sm:$0xff] }
   0xe   :  { %200 = vmatpush.msra.mxu0 %v171_v12  ;;  %830 = vmatpush.msra.mxu3 %v171_v12  ;;  %v90_v33 = vld [vmem:[%s1699_s1 + $0x240] sm:$0xff]  ;;  %v23_v42 = vld [vmem:[%s1699_s1 + $0x28] sm:$0xff]  ;;  %v97_v43 = vld [vmem:[%s1699_s1 + $0x278] sm:$0xff] }
   0xf   :  { %433 = vmatpush.msra.mxu1 %v187_v13  ;;  %846 = vmatpush.msra.mxu2 %v187_v13  ;;  %v22_v40 = vld [vmem:[%s1699_s1 + $0x20] sm:$0xff]  ;;  %v24_v44 = vld [vmem:[%s1699_s1 + $0x30] sm:$0xff]  ;;  %v25_v46 = vld [vmem:[%s1699_s1 + $0x38] sm:$0xff] }
  0x10   :  { %201 = vmatpush.msra.mxu0 %v170_v14  ;;  %831 = vmatpush.msra.mxu3 %v170_v14  ;;  %v94_v41 = vld [vmem:[%s1699_s1 + $0x260] sm:$0xff]  ;;  %v96_v45 = vld [vmem:[%s1699_s1 + $0x270] sm:$0xff]  ;;  %v99_v47 = vld [vmem:[%s1699_s1 + $0x288] sm:$0xff] }
  0x11   :  { %434 = vmatpush.msra.mxu1 %v186_v15  ;;  %847 = vmatpush.msra.mxu2 %v186_v15  ;;  %v26_v48 = vld [vmem:[%s1699_s1 + $0x40] sm:$0xff]  ;;  %v27_v50 = vld [vmem:[%s1699_s1 + $0x48] sm:$0xff]  ;;  %v101_v51 = vld [vmem:[%s1699_s1 + $0x298] sm:$0xff] }
  0x12   :  { %202 = vmatpush.msra.mxu0 %v169_v16  ;;  %832 = vmatpush.msra.mxu3 %v169_v16  ;;  %v98_v49 = vld [vmem:[%s1699_s1 + $0x280] sm:$0xff]  ;;  %v28_v52 = vld [vmem:[%s1699_s1 + $0x50] sm:$0xff]  ;;  %v29_v54 = vld [vmem:[%s1699_s1 + $0x58] sm:$0xff] }
  0x13   :  { %435 = vmatpush.msra.mxu1 %v185_v17  ;;  %848 = vmatpush.msra.mxu2 %v185_v17  ;;  %v100_v53 = vld [vmem:[%s1699_s1 + $0x290] sm:$0xff]  ;;  %v103_v55 = vld [vmem:[%s1699_s1 + $0x2a8] sm:$0xff]  ;;  %v30_v56 = vld [vmem:[%s1699_s1 + $0x60] sm:$0xff] }
  0x14   :  { %203 = vmatpush.msra.mxu0 %v168_v18  ;;  %833 = vmatpush.msra.mxu3 %v168_v18  ;;  %v102_v57 = vld [vmem:[%s1699_s1 + $0x2a0] sm:$0xff]  ;;  %v31_v58 = vld [vmem:[%s1699_s1 + $0x68] sm:$0xff]  ;;  %v105_v59 = vld [vmem:[%s1699_s1 + $0x2b8] sm:$0xff] }
  0x15   :  { %436 = vmatpush.msra.mxu1 %v184_v19  ;;  %849 = vmatpush.msra.mxu2 %v184_v19  ;;  %v32_v60 = vld [vmem:[%s1699_s1 + $0x70] sm:$0xff]  ;;  %v33_v62 = vld [vmem:[%s1699_s1 + $0x78] sm:$0xff]  ;;  %v107_v63 = vld [vmem:[%s1699_s1 + $0x2c8] sm:$0xff] }
  0x16   :  { %204 = vmatpush.msra.mxu0 %v167_v20  ;;  %834 = vmatpush.msra.mxu3 %v167_v20  ;;  %v104_v61 = vld [vmem:[%s1699_s1 + $0x2b0] sm:$0xff]  ;;  %v34_v0 = vld [vmem:[%s1699_s1 + $0x80] sm:$0xff]  ;;  %v35_v2 = vld [vmem:[%s1699_s1 + $0x88] sm:$0xff] }
  0x17   :  { %437 = vmatpush.msra.mxu1 %v183_v21  ;;  %850 = vmatpush.msra.mxu2 %v183_v21  ;;  %v106_v1 = vld [vmem:[%s1699_s1 + $0x2c0] sm:$0xff]  ;;  %v109_v3 = vld [vmem:[%s1699_s1 + $0x2d8] sm:$0xff]  ;;  %v36_v4 = vld [vmem:[%s1699_s1 + $0x90] sm:$0xff] }
  0x18   :  { %205 = vmatpush.msra.mxu0 %v166_v22  ;;  %835 = vmatpush.msra.mxu3 %v166_v22  ;;  %v108_v5 = vld [vmem:[%s1699_s1 + $0x2d0] sm:$0xff]  ;;  %v37_v6 = vld [vmem:[%s1699_s1 + $0x98] sm:$0xff]  ;;  %v111_v7 = vld [vmem:[%s1699_s1 + $0x2e8] sm:$0xff] }
  0x19   :  { %438 = vmatpush.msra.mxu1 %v182_v23  ;;  %851 = vmatpush.msra.mxu2 %v182_v23  ;;  %v38_v8 = vld [vmem:[%s1699_s1 + $0xa0] sm:$0xff]  ;;  %v39_v10 = vld [vmem:[%s1699_s1 + $0xa8] sm:$0xff]  ;;  %v113_v11 = vld [vmem:[%s1699_s1 + $0x2f8] sm:$0xff] }
  0x1a   :  { %206 = vmatpush.msra.mxu0 %v165_v24  ;;  %836 = vmatpush.msra.mxu3 %v165_v24  ;;  %v110_v9 = vld [vmem:[%s1699_s1 + $0x2e0] sm:$0xff]  ;;  %v40_v12 = vld [vmem:[%s1699_s1 + $0xb0] sm:$0xff]  ;;  %v41_v14 = vld [vmem:[%s1699_s1 + $0xb8] sm:$0xff] }
  0x1b   :  { %439 = vmatpush.msra.mxu1 %v181_v25  ;;  %852 = vmatpush.msra.mxu2 %v181_v25  ;;  %v112_v13 = vld [vmem:[%s1699_s1 + $0x2f0] sm:$0xff]  ;;  %v115_v15 = vld [vmem:[%s1699_s1 + $0x308] sm:$0xff]  ;;  %v42_v16 = vld [vmem:[%s1699_s1 + $0xc0] sm:$0xff] }
  0x1c   :  { %207 = vmatpush.msra.mxu0 %v164_v26  ;;  %837 = vmatpush.msra.mxu3 %v164_v26  ;;  %v114_v17 = vld [vmem:[%s1699_s1 + $0x300] sm:$0xff]  ;;  %v43_v18 = vld [vmem:[%s1699_s1 + $0xc8] sm:$0xff]  ;;  %v117_v19 = vld [vmem:[%s1699_s1 + $0x318] sm:$0xff] }
  0x1d   :  { %440 = vmatpush.msra.mxu1 %v180_v27  ;;  %853 = vmatpush.msra.mxu2 %v180_v27  ;;  %v44_v20 = vld [vmem:[%s1699_s1 + $0xd0] sm:$0xff]  ;;  %v45_v22 = vld [vmem:[%s1699_s1 + $0xd8] sm:$0xff]  ;;  %v119_v23 = vld [vmem:[%s1699_s1 + $0x328] sm:$0xff] }
  0x1e   :  { %208 = vmatpush.msra.mxu0 %v163_v28  ;;  %838 = vmatpush.msra.mxu3 %v163_v28  ;;  %v116_v21 = vld [vmem:[%s1699_s1 + $0x310] sm:$0xff]  ;;  %v46_v24 = vld [vmem:[%s1699_s1 + $0xe0] sm:$0xff]  ;;  %v47_v26 = vld [vmem:[%s1699_s1 + $0xe8] sm:$0xff] }
  0x1f   :  { %441 = vmatpush.msra.mxu1 %v179_v29  ;;  %854 = vmatpush.msra.mxu2 %v179_v29  ;;  %v118_v25 = vld [vmem:[%s1699_s1 + $0x320] sm:$0xff]  ;;  %v121_v27 = vld [vmem:[%s1699_s1 + $0x338] sm:$0xff]  ;;  %v48_v28 = vld [vmem:[%s1699_s1 + $0xf0] sm:$0xff] }
  0x20   :  { %209 = vmatpush.msra.mxu0 %v162_v30  ;;  %839 = vmatpush.msra.mxu3 %v162_v30  ;;  %v120_v29 = vld [vmem:[%s1699_s1 + $0x330] sm:$0xff]  ;;  %v49_v30 = vld [vmem:[%s1699_s1 + $0xf8] sm:$0xff] }
  0x21   :  { %442 = vmatpush.msra.mxu1 %v178_v31  ;;  %210 = vmatmul.f32.vlgmr.msra.gmra.mxu0 %v18_v32 }
  0x22   :  { %318 = vmatmul.f32.vlgmr.msra.gmra.mxu3 %v90_v33  ;;  %443 = vmatmul.f32.vlgmr.msra.gmra.mxu1 %v19_v34  ;;  %v50_v33 = vld [vmem:[%s1699_s1 + $0x100] sm:$0xff] }
  0x23   :  { %855 = vmatpush.msra.mxu2 %v178_v31  ;;  %v123_v31 = vld [vmem:[%s1699_s1 + $0x348] sm:$0xff] }
  0x24   :  { %554 = vmatmul.f32.vlgmr.msra.gmra.mxu2 %v93_v35  ;;  %v122_v35 = vld [vmem:[%s1699_s1 + $0x340] sm:$0xff] }
  0x29   :  { %213 = vmatmul.f32.gmra.mxu0 %v20_v36  ;;  %v51_v36 = vld [vmem:[%s1699_s1 + $0x108] sm:$0xff] }
  0x2a   :  { %321 = vmatmul.f32.gmra.mxu3 %v92_v37  ;;  %446 = vmatmul.f32.gmra.mxu1 %v21_v38  ;;  %v125_v37 = vld [vmem:[%s1699_s1 + $0x358] sm:$0xff] }
  0x2c   :  { %557 = vmatmul.f32.gmra.mxu2 %v95_v39 }
  0x31   :  { %216 = vmatmul.f32.gmra.mxu0 %v22_v40  ;;  %v52_v40 = vld [vmem:[%s1699_s1 + $0x110] sm:$0xff] }
  0x32   :  { %324 = vmatmul.f32.gmra.mxu3 %v94_v41  ;;  %449 = vmatmul.f32.gmra.mxu1 %v23_v42  ;;  %v124_v42 = vld [vmem:[%s1699_s1 + $0x350] sm:$0xff] }
  0x34   :  { %560 = vmatmul.f32.gmra.mxu2 %v97_v43  ;;  %v53_v43 = vld [vmem:[%s1699_s1 + $0x118] sm:$0xff] }
  0x39   :  { %219 = vmatmul.f32.gmra.mxu0 %v24_v44 }
  0x3a   :  { %327 = vmatmul.f32.gmra.mxu3 %v96_v45  ;;  %452 = vmatmul.f32.gmra.mxu1 %v25_v46  ;;  %v127_v45 = vld [vmem:[%s1699_s1 + $0x368] sm:$0xff] }
  0x3c   :  { %563 = vmatmul.f32.gmra.mxu2 %v99_v47 }
  0x41   :  { %222 = vmatmul.f32.gmra.mxu0 %v26_v48 }
  0x42   :  { %330 = vmatmul.f32.gmra.mxu3 %v98_v49  ;;  %455 = vmatmul.f32.gmra.mxu1 %v27_v50  ;;  %v54_v49 = vld [vmem:[%s1699_s1 + $0x120] sm:$0xff] }
  0x44   :  { %566 = vmatmul.f32.gmra.mxu2 %v101_v51  ;;  %v126_v51 = vld [vmem:[%s1699_s1 + $0x360] sm:$0xff] }
  0x49   :  { %225 = vmatmul.f32.gmra.mxu0 %v28_v52  ;;  %v55_v52 = vld [vmem:[%s1699_s1 + $0x128] sm:$0xff] }
  0x4a   :  { %333 = vmatmul.f32.gmra.mxu3 %v100_v53  ;;  %458 = vmatmul.f32.gmra.mxu1 %v29_v54  ;;  %v129_v54 = vld [vmem:[%s1699_s1 + $0x378] sm:$0xff] }
  0x4c   :  { %569 = vmatmul.f32.gmra.mxu2 %v103_v55 }
  0x51   :  { %228 = vmatmul.f32.gmra.mxu0 %v30_v56 }
  0x52   :  { %336 = vmatmul.f32.gmra.mxu3 %v102_v57  ;;  %461 = vmatmul.f32.gmra.mxu1 %v31_v58  ;;  %v56_v58 = vld [vmem:[%s1699_s1 + $0x130] sm:$0xff] }
  0x54   :  { %572 = vmatmul.f32.gmra.mxu2 %v105_v59 }
  0x59   :  { %231 = vmatmul.f32.gmra.mxu0 %v32_v60  ;;  %v128_v60 = vld [vmem:[%s1699_s1 + $0x370] sm:$0xff] }
  0x5a   :  { %339 = vmatmul.f32.gmra.mxu3 %v104_v61  ;;  %464 = vmatmul.f32.gmra.mxu1 %v33_v62  ;;  %v57_v61 = vld [vmem:[%s1699_s1 + $0x138] sm:$0xff] }
  0x5c   :  { %575 = vmatmul.f32.gmra.mxu2 %v107_v63  ;;  %v131_v63 = vld [vmem:[%s1699_s1 + $0x388] sm:$0xff] }
  0x61   :  { %234 = vmatmul.f32.gmra.mxu0 %v34_v0 }
  0x62   :  { %342 = vmatmul.f32.gmra.mxu3 %v106_v1  ;;  %467 = vmatmul.f32.gmra.mxu1 %v35_v2 }
  0x64   :  { %578 = vmatmul.f32.gmra.mxu2 %v109_v3  ;;  %v58_v3 = vld [vmem:[%s1699_s1 + $0x140] sm:$0xff] }
  0x69   :  { %237 = vmatmul.f32.gmra.mxu0 %v36_v4 }
  0x6a   :  { %345 = vmatmul.f32.gmra.mxu3 %v108_v5  ;;  %470 = vmatmul.f32.gmra.mxu1 %v37_v6  ;;  %v130_v5 = vld [vmem:[%s1699_s1 + $0x380] sm:$0xff]  ;;  %v59_v6 = vld [vmem:[%s1699_s1 + $0x148] sm:$0xff] }
  0x6c   :  { %581 = vmatmul.f32.gmra.mxu2 %v111_v7 }
  0x71   :  { %240 = vmatmul.f32.gmra.mxu0 %v38_v8  ;;  %v133_v8 = vld [vmem:[%s1699_s1 + $0x398] sm:$0xff] }
  0x72   :  { %348 = vmatmul.f32.gmra.mxu3 %v110_v9  ;;  %473 = vmatmul.f32.gmra.mxu1 %v39_v10 }
  0x74   :  { %584 = vmatmul.f32.gmra.mxu2 %v113_v11 }
  0x79   :  { %243 = vmatmul.f32.gmra.mxu0 %v40_v12  ;;  %v60_v12 = vld [vmem:[%s1699_s1 + $0x150] sm:$0xff] }
  0x7a   :  { %351 = vmatmul.f32.gmra.mxu3 %v112_v13  ;;  %476 = vmatmul.f32.gmra.mxu1 %v41_v14  ;;  %v132_v14 = vld [vmem:[%s1699_s1 + $0x390] sm:$0xff] }
  0x7c   :  { %587 = vmatmul.f32.gmra.mxu2 %v115_v15  ;;  %v61_v15 = vld [vmem:[%s1699_s1 + $0x158] sm:$0xff] }
  0x81   :  { %246 = vmatmul.f32.gmra.mxu0 %v42_v16 }
  0x82   :  { %354 = vmatmul.f32.gmra.mxu3 %v114_v17  ;;  %479 = vmatmul.f32.gmra.mxu1 %v43_v18  ;;  %v135_v17 = vld [vmem:[%s1699_s1 + $0x3a8] sm:$0xff] }
  0x84   :  { %590 = vmatmul.f32.gmra.mxu2 %v117_v19 }
  0x89   :  { %249 = vmatmul.f32.gmra.mxu0 %v44_v20 }
  0x8a   :  { %357 = vmatmul.f32.gmra.mxu3 %v116_v21  ;;  %482 = vmatmul.f32.gmra.mxu1 %v45_v22  ;;  %v62_v21 = vld [vmem:[%s1699_s1 + $0x160] sm:$0xff] }
  0x8c   :  { %593 = vmatmul.f32.gmra.mxu2 %v119_v23  ;;  %v134_v23 = vld [vmem:[%s1699_s1 + $0x3a0] sm:$0xff] }
  0x91   :  { %252 = vmatmul.f32.gmra.mxu0 %v46_v24  ;;  %v63_v24 = vld [vmem:[%s1699_s1 + $0x168] sm:$0xff] }
  0x92   :  { %360 = vmatmul.f32.gmra.mxu3 %v118_v25  ;;  %485 = vmatmul.f32.gmra.mxu1 %v47_v26  ;;  %v137_v26 = vld [vmem:[%s1699_s1 + $0x3b8] sm:$0xff] }
  0x94   :  { %596 = vmatmul.f32.gmra.mxu2 %v121_v27 }
  0x99   :  { %255 = vmatmul.f32.gmra.mxu0 %v48_v28 }
  0x9a   :  { %363 = vmatmul.f32.gmra.mxu3 %v120_v29  ;;  %488 = vmatmul.f32.gmra.mxu1 %v49_v30  ;;  %v64_v30 = vld [vmem:[%s1699_s1 + $0x170] sm:$0xff] }
  0x9c   :  { %599 = vmatmul.f32.gmra.mxu2 %v123_v31 }
  0x9e   :  { %v1179_v32 = vpop.f32.mrf.mxu0 }
  0x9f   :  { %v1184_v34 = vpop.f32.mrf.mxu1 }
  0xa1   :  { %258 = vmatmul.f32.gmra.mxu0 %v50_v33  ;;  %v136_v33 = vld [vmem:[%s1699_s1 + $0x3b0] sm:$0xff] }
  0xa2   :  { %366 = vmatmul.f32.gmra.mxu3 %v122_v35  ;;  %491 = vmatmul.f32.gmra.mxu1 %v51_v36  ;;  %v65_v35 = vld [vmem:[%s1699_s1 + $0x178] sm:$0xff] }
  0xa4   :  { %602 = vmatmul.f32.gmra.mxu2 %v125_v37  ;;  %v139_v37 = vld [vmem:[%s1699_s1 + $0x3c8] sm:$0xff] }
  0xa5   :  { %v1195_v38 = vpop.f32.mrf.mxu3 }
  0xa6   :  { %1703 = vst [vmem:[#allocation3_spill] sm:$0xff] %v1195_v38  ;;  %v1197_v39 = vpop.f32.mrf.mxu0  ;;  %v91_v38 = vld [vmem:[%s1699_s1 + $0x248] sm:$0xff] }
  0xa7   :  { %v1202_v41 = vpop.f32.mrf.mxu1  ;;  %v555_v44 = vpop.f32.mrf.mxu2 }
  0xa9   :  { %261 = vmatmul.f32.gmra.mxu0 %v52_v40 }
  0xaa   :  { %369 = vmatmul.f32.gmra.mxu3 %v124_v42  ;;  %494 = vmatmul.f32.gmra.mxu1 %v53_v43 }
  0xac   :  { %605 = vmatmul.f32.gmra.mxu2 %v127_v45 }
  0xad   :  { %v322_v46 = vpop.f32.mrf.mxu3 }
  0xae   :  { %v1213_v47 = vadd.f32 %v555_v44, %v322_v46  ;;  %v1215_v48 = vpop.f32.mrf.mxu0  ;;  %v66_v44 = vld [vmem:[%s1699_s1 + $0x180] sm:$0xff] }
  0xaf   :  { %v1220_v50 = vpop.f32.mrf.mxu1  ;;  %v558_v53 = vpop.f32.mrf.mxu2  ;;  %v138_v46 = vld [vmem:[%s1699_s1 + $0x3c0] sm:$0xff] }
  0xb1   :  { %264 = vmatmul.f32.gmra.mxu0 %v54_v49  ;;  %v67_v49 = vld [vmem:[%s1699_s1 + $0x188] sm:$0xff] }
  0xb2   :  { %372 = vmatmul.f32.gmra.mxu3 %v126_v51  ;;  %497 = vmatmul.f32.gmra.mxu1 %v55_v52  ;;  %v141_v52 = vld [vmem:[%s1699_s1 + $0x3d8] sm:$0xff] }
  0xb4   :  { %608 = vmatmul.f32.gmra.mxu2 %v129_v54 }
  0xb5   :  { %v325_v55 = vpop.f32.mrf.mxu3 }
  0xb6   :  { %v1231_v56 = vadd.f32 %v558_v53, %v325_v55  ;;  %v1233_v57 = vpop.f32.mrf.mxu0 }
  0xb7   :  { %v1238_v59 = vpop.f32.mrf.mxu1  ;;  %v561_v62 = vpop.f32.mrf.mxu2 }
  0xb9   :  { %267 = vmatmul.f32.gmra.mxu0 %v56_v58  ;;  %v68_v58 = vld [vmem:[%s1699_s1 + $0x190] sm:$0xff] }
  0xba   :  { %375 = vmatmul.f32.gmra.mxu3 %v128_v60  ;;  %500 = vmatmul.f32.gmra.mxu1 %v57_v61  ;;  %v140_v61 = vld [vmem:[%s1699_s1 + $0x3d0] sm:$0xff] }
  0xbc   :  { %611 = vmatmul.f32.gmra.mxu2 %v131_v63 }
  0xbd   :  { %v328_v0 = vpop.f32.mrf.mxu3 }
  0xbe   :  { %v1249_v1 = vadd.f32 %v561_v62, %v328_v0  ;;  %v1251_v2 = vpop.f32.mrf.mxu0  ;;  %v69_v62 = vld [vmem:[%s1699_s1 + $0x198] sm:$0xff]  ;;  %v143_v0 = vld [vmem:[%s1699_s1 + $0x3e8] sm:$0xff] }
  0xbf   :  { %v1256_v4 = vpop.f32.mrf.mxu1  ;;  %v564_v7 = vpop.f32.mrf.mxu2 }
  0xc1   :  { %270 = vmatmul.f32.gmra.mxu0 %v58_v3 }
  0xc2   :  { %378 = vmatmul.f32.gmra.mxu3 %v130_v5  ;;  %503 = vmatmul.f32.gmra.mxu1 %v59_v6 }
  0xc4   :  { %614 = vmatmul.f32.gmra.mxu2 %v133_v8 }
  0xc5   :  { %v331_v9 = vpop.f32.mrf.mxu3 }
  0xc6   :  { %v1267_v10 = vadd.f32 %v564_v7, %v331_v9  ;;  %v1269_v11 = vpop.f32.mrf.mxu0  ;;  %v70_v7 = vld [vmem:[%s1699_s1 + $0x1a0] sm:$0xff] }
  0xc7   :  { %v1274_v13 = vpop.f32.mrf.mxu1  ;;  %v567_v16 = vpop.f32.mrf.mxu2  ;;  %v142_v9 = vld [vmem:[%s1699_s1 + $0x3e0] sm:$0xff] }
  0xc9   :  { %273 = vmatmul.f32.gmra.mxu0 %v60_v12  ;;  %v71_v12 = vld [vmem:[%s1699_s1 + $0x1a8] sm:$0xff] }
  0xca   :  { %381 = vmatmul.f32.gmra.mxu3 %v132_v14  ;;  %506 = vmatmul.f32.gmra.mxu1 %v61_v15  ;;  %v145_v15 = vld [vmem:[%s1699_s1 + $0x3f8] sm:$0xff] }
  0xcc   :  { %617 = vmatmul.f32.gmra.mxu2 %v135_v17 }
  0xcd   :  { %v334_v18 = vpop.f32.mrf.mxu3 }
  0xce   :  { %v1285_v19 = vadd.f32 %v567_v16, %v334_v18  ;;  %v1287_v20 = vpop.f32.mrf.mxu0 }
  0xcf   :  { %v1292_v22 = vpop.f32.mrf.mxu1  ;;  %v570_v25 = vpop.f32.mrf.mxu2 }
  0xd1   :  { %276 = vmatmul.f32.gmra.mxu0 %v62_v21  ;;  %v72_v21 = vld [vmem:[%s1699_s1 + $0x1b0] sm:$0xff] }
  0xd2   :  { %384 = vmatmul.f32.gmra.mxu3 %v134_v23  ;;  %509 = vmatmul.f32.gmra.mxu1 %v63_v24  ;;  %v144_v24 = vld [vmem:[%s1699_s1 + $0x3f0] sm:$0xff] }
  0xd4   :  { %620 = vmatmul.f32.gmra.mxu2 %v137_v26 }
  0xd5   :  { %v337_v27 = vpop.f32.mrf.mxu3 }
  0xd6   :  { %v1303_v28 = vadd.f32 %v570_v25, %v337_v27  ;;  %v1305_v29 = vpop.f32.mrf.mxu0  ;;  %v73_v25 = vld [vmem:[%s1699_s1 + $0x1b8] sm:$0xff]  ;;  %v147_v27 = vld [vmem:[%s1699_s1 + $0x408] sm:$0xff] }
  0xd7   :  { %v1310_v31 = vpop.f32.mrf.mxu1  ;;  %v573_v36 = vpop.f32.mrf.mxu2 }
  0xd9   :  { %279 = vmatmul.f32.gmra.mxu0 %v64_v30 }
  0xda   :  { %387 = vmatmul.f32.gmra.mxu3 %v136_v33  ;;  %512 = vmatmul.f32.gmra.mxu1 %v65_v35 }
  0xdc   :  { %623 = vmatmul.f32.gmra.mxu2 %v139_v37 }
  0xdd   :  { %v340_v40 = vpop.f32.mrf.mxu3 }
  0xde   :  { %v1321_v42 = vadd.f32 %v573_v36, %v340_v40  ;;  %v1323_v43 = vpop.f32.mrf.mxu0  ;;  %v74_v36 = vld [vmem:[%s1699_s1 + $0x1c0] sm:$0xff] }
  0xdf   :  { %v1328_v45 = vpop.f32.mrf.mxu1  ;;  %v576_v51 = vpop.f32.mrf.mxu2  ;;  %v146_v40 = vld [vmem:[%s1699_s1 + $0x400] sm:$0xff] }
  0xe0   :  { %1704 = vst [vmem:[#allocation4_spill] sm:$0xff] %v1321_v42 }
  0xe1   :  { %282 = vmatmul.f32.gmra.mxu0 %v66_v44  ;;  %v75_v44 = vld [vmem:[%s1699_s1 + $0x1c8] sm:$0xff] }
  0xe2   :  { %390 = vmatmul.f32.gmra.mxu3 %v138_v46  ;;  %515 = vmatmul.f32.gmra.mxu1 %v67_v49  ;;  %v149_v49 = vld [vmem:[%s1699_s1 + $0x418] sm:$0xff] }
  0xe4   :  { %626 = vmatmul.f32.gmra.mxu2 %v141_v52 }
  0xe5   :  { %v343_v53 = vpop.f32.mrf.mxu3 }
  0xe6   :  { %v1339_v54 = vadd.f32 %v576_v51, %v343_v53  ;;  %v1341_v55 = vpop.f32.mrf.mxu0  ;;  %v76_v53 = vld [vmem:[%s1699_s1 + $0x1d0] sm:$0xff] }
  0xe7   :  { %v1346_v60 = vpop.f32.mrf.mxu1  ;;  %v579_v63 = vpop.f32.mrf.mxu2 }
  0xe8   :  { %1705 = vst [vmem:[#allocation5_spill] sm:$0xff] %v1339_v54 }
  0xe9   :  { %285 = vmatmul.f32.gmra.mxu0 %v68_v58 }
  0xea   :  { %393 = vmatmul.f32.gmra.mxu3 %v140_v61  ;;  %518 = vmatmul.f32.gmra.mxu1 %v69_v62  ;;  %v148_v61 = vld [vmem:[%s1699_s1 + $0x410] sm:$0xff]  ;;  %v77_v62 = vld [vmem:[%s1699_s1 + $0x1d8] sm:$0xff] }
  0xec   :  { %629 = vmatmul.f32.gmra.mxu2 %v143_v0 }
  0xed   :  { %v346_v3 = vpop.f32.mrf.mxu3 }
  0xee   :  { %v1357_v5 = vadd.f32 %v579_v63, %v346_v3  ;;  %v1359_v6 = vpop.f32.mrf.mxu0  ;;  %v151_v3 = vld [vmem:[%s1699_s1 + $0x428] sm:$0xff] }
  0xef   :  { %v1364_v8 = vpop.f32.mrf.mxu1  ;;  %v582_v14 = vpop.f32.mrf.mxu2 }
  0xf1   :  { %288 = vmatmul.f32.gmra.mxu0 %v70_v7 }
  0xf2   :  { %396 = vmatmul.f32.gmra.mxu3 %v142_v9  ;;  %521 = vmatmul.f32.gmra.mxu1 %v71_v12  ;;  %v78_v12 = vld [vmem:[%s1699_s1 + $0x1e0] sm:$0xff] }
  0xf4   :  { %632 = vmatmul.f32.gmra.mxu2 %v145_v15  ;;  %v150_v15 = vld [vmem:[%s1699_s1 + $0x420] sm:$0xff] }
  0xf5   :  { %v349_v16 = vpop.f32.mrf.mxu3 }
  0xf6   :  { %v1375_v17 = vadd.f32 %v582_v14, %v349_v16  ;;  %v1377_v18 = vpop.f32.mrf.mxu0  ;;  %v79_v16 = vld [vmem:[%s1699_s1 + $0x1e8] sm:$0xff] }
  0xf7   :  { %v1382_v23 = vpop.f32.mrf.mxu1  ;;  %v585_v26 = vpop.f32.mrf.mxu2 }
  0xf9   :  { %291 = vmatmul.f32.gmra.mxu0 %v72_v21 }
  0xfa   :  { %399 = vmatmul.f32.gmra.mxu3 %v144_v24  ;;  %524 = vmatmul.f32.gmra.mxu1 %v73_v25  ;;  %v153_v25 = vld [vmem:[%s1699_s1 + $0x438] sm:$0xff] }
  0xfc   :  { %635 = vmatmul.f32.gmra.mxu2 %v147_v27 }
  0xfd   :  { %v352_v30 = vpop.f32.mrf.mxu3 }
  0xfe   :  { %v1393_v33 = vadd.f32 %v585_v26, %v352_v30  ;;  %v1395_v35 = vpop.f32.mrf.mxu0 }
  0xff   :  { %v1400_v37 = vpop.f32.mrf.mxu1  ;;  %v1408_v46 = vpop.f32.mrf.mxu2 }
 0x101   :  { %294 = vmatmul.f32.gmra.mxu0 %v74_v36  ;;  %v80_v36 = vld [vmem:[%s1699_s1 + $0x1f0] sm:$0xff] }
 0x102   :  { %402 = vmatmul.f32.gmra.mxu3 %v146_v40  ;;  %527 = vmatmul.f32.gmra.mxu1 %v75_v44  ;;  %v152_v44 = vld [vmem:[%s1699_s1 + $0x430] sm:$0xff] }
 0x104   :  { %638 = vmatmul.f32.gmra.mxu2 %v149_v49  ;;  %v81_v49 = vld [vmem:[%s1699_s1 + $0x1f8] sm:$0xff] }
 0x105   :  { %v1413_v51 = vpop.f32.mrf.mxu3 }
 0x106   :  { %v250_v52 = vpop.f32.mrf.mxu0 }
 0x107   :  { %v483_v58 = vpop.f32.mrf.mxu1  ;;  %v1424_v63 = vpop.f32.mrf.mxu2 }
 0x108   :  { %v1426_v0 = vadd.f32 %v483_v58, %v250_v52  ;;  %v155_v58 = vld [vmem:[%s1699_s1 + $0x448] sm:$0xff] }
 0x109   :  { %297 = vmatmul.f32.gmra.mxu0 %v76_v53 }
 0x10a   :  { %405 = vmatmul.f32.gmra.mxu3 %v148_v61  ;;  %530 = vmatmul.f32.gmra.mxu1 %v77_v62 }
 0x10c   :  { %641 = vmatmul.f32.gmra.mxu2 %v151_v3 }
 0x10d   :  { %v1431_v7 = vpop.f32.mrf.mxu3 }
 0x10e   :  { %v253_v9 = vpop.f32.mrf.mxu0 }
 0x10f   :  { %v486_v14 = vpop.f32.mrf.mxu1  ;;  %v594_v21 = vpop.f32.mrf.mxu2 }
 0x110   :  { %v1442_v24 = vadd.f32 %v486_v14, %v253_v9  ;;  %v82_v9 = vld [vmem:[%s1699_s1 + $0x200] sm:$0xff] }
 0x111   :  { %300 = vmatmul.f32.gmra.mxu0 %v78_v12  ;;  %v154_v14 = vld [vmem:[%s1699_s1 + $0x440] sm:$0xff] }
 0x112   :  { %408 = vmatmul.f32.gmra.mxu3 %v150_v15  ;;  %533 = vmatmul.f32.gmra.mxu1 %v79_v16  ;;  %v83_v15 = vld [vmem:[%s1699_s1 + $0x208] sm:$0xff] }
 0x114   :  { %644 = vmatmul.f32.gmra.mxu2 %v153_v25  ;;  %v157_v25 = vld [vmem:[%s1699_s1 + $0x458] sm:$0xff] }
 0x115   :  { %v361_v26 = vpop.f32.mrf.mxu3 }
 0x116   :  { %v1447_v27 = vadd.f32 %v594_v21, %v361_v26  ;;  %v256_v30 = vpop.f32.mrf.mxu0 }
 0x117   :  { %v489_v40 = vpop.f32.mrf.mxu1  ;;  %v597_v52 = vpop.f32.mrf.mxu2 }
 0x118   :  { %1706 = vst [vmem:[#allocation6_spill] sm:$0xff] %v1447_v27  ;;  %v1458_v53 = vadd.f32 %v489_v40, %v256_v30  ;;  %v84_v40 = vld [vmem:[%s1699_s1 + $0x210] sm:$0xff] }
 0x119   :  { %303 = vmatmul.f32.gmra.mxu0 %v80_v36 }
 0x11a   :  { %411 = vmatmul.f32.gmra.mxu3 %v152_v44  ;;  %536 = vmatmul.f32.gmra.mxu1 %v81_v49  ;;  %v156_v49 = vld [vmem:[%s1699_s1 + $0x450] sm:$0xff] }
 0x11c   :  { %647 = vmatmul.f32.gmra.mxu2 %v155_v58 }
 0x11d   :  { %v364_v61 = vpop.f32.mrf.mxu3 }
 0x11e   :  { %v1463_v62 = vadd.f32 %v597_v52, %v364_v61  ;;  %v259_v3 = vpop.f32.mrf.mxu0  ;;  %v85_v52 = vld [vmem:[%s1699_s1 + $0x218] sm:$0xff] }
 0x11f   :  { %v492_v12 = vpop.f32.mrf.mxu1  ;;  %v600_v16 = vpop.f32.mrf.mxu2 }
 0x120   :  { %1707 = vst [vmem:[#allocation7_spill] sm:$0xff] %v1463_v62  ;;  %v1474_v21 = vadd.f32 %v492_v12, %v259_v3  ;;  %v159_v3 = vld [vmem:[%s1699_s1 + $0x468] sm:$0xff] }
 0x121   :  { %306 = vmatmul.f32.gmra.mxu0 %v82_v9 }
 0x122   :  { %414 = vmatmul.f32.gmra.mxu3 %v154_v14  ;;  %539 = vmatmul.f32.gmra.mxu1 %v83_v15  ;;  %v86_v15 = vld [vmem:[%s1699_s1 + $0x220] sm:$0xff] }
 0x124   :  { %650 = vmatmul.f32.gmra.mxu2 %v157_v25  ;;  %v158_v25 = vld [vmem:[%s1699_s1 + $0x460] sm:$0xff] }
 0x125   :  { %v367_v26 = vpop.f32.mrf.mxu3 }
 0x126   :  { %v1479_v30 = vadd.f32 %v600_v16, %v367_v26  ;;  %v262_v36 = vpop.f32.mrf.mxu0  ;;  %v87_v26 = vld [vmem:[%s1699_s1 + $0x228] sm:$0xff] }
 0x127   :  { %v495_v44 = vpop.f32.mrf.mxu1  ;;  %v603_v58 = vpop.f32.mrf.mxu2 }
 0x128   :  { %1708 = vst [vmem:[#allocation8_spill] sm:$0xff] %v1479_v30  ;;  %v1490_v61 = vadd.f32 %v495_v44, %v262_v36  ;;  %v161_v44 = vld [vmem:[%s1699_s1 + $0x478] sm:$0xff] }
 0x129   :  { %309 = vmatmul.f32.gmra.mxu0 %v84_v40 }
 0x12a   :  { %417 = vmatmul.f32.gmra.mxu3 %v156_v49  ;;  %542 = vmatmul.f32.gmra.mxu1 %v85_v52 }
 0x12c   :  { %653 = vmatmul.f32.gmra.mxu2 %v159_v3  ;;  %v88_v3 = vld [vmem:[%s1699_s1 + $0x230] sm:$0xff] }
 0x12d   :  { %v370_v9 = vpop.f32.mrf.mxu3 }
 0x12e   :  { %v1495_v12 = vadd.f32 %v603_v58, %v370_v9  ;;  %v265_v14 = vpop.f32.mrf.mxu0 }
 0x12f   :  { %v498_v16 = vpop.f32.mrf.mxu1  ;;  %v606_v36 = vpop.f32.mrf.mxu2 }
 0x130   :  { %v1506_v40 = vadd.f32 %v498_v16, %v265_v14  ;;  %v160_v14 = vld [vmem:[%s1699_s1 + $0x470] sm:$0xff] }
 0x131   :  { %312 = vmatmul.f32.gmra.mxu0 %v86_v15  ;;  %v89_v15 = vld [vmem:[%s1699_s1 + $0x238] sm:$0xff] }
 0x132   :  { %420 = vmatmul.f32.gmra.mxu3 %v158_v25  ;;  %545 = vmatmul.f32.gmra.mxu1 %v87_v26  ;;  %v481_v26 = vadd.f32 %v1400_v37, %v1395_v35  ;;  %v460_v35 = vadd.f32 %v1274_v13, %v1269_v11 }
 0x134   :  { %656 = vmatmul.f32.gmra.mxu2 %v161_v44  ;;  %v457_v44 = vadd.f32 %v1256_v4, %v1251_v2 }
 0x135   :  { %v373_v49 = vpop.f32.mrf.mxu3 }
 0x136   :  { %v1511_v52 = vadd.f32 %v606_v36, %v373_v49  ;;  %v268_v58 = vpop.f32.mrf.mxu0 }
 0x137   :  { %v501_v9 = vpop.f32.mrf.mxu1  ;;  %v609_v16 = vpop.f32.mrf.mxu2 }
 0x138   :  { %v1522_v25 = vadd.f32 %v501_v9, %v268_v58  ;;  %v664_v9 = vmax.f32 %v457_v44, %v481_v26 }
 0x139   :  { %315 = vmatmul.f32.gmra.mxu0 %v88_v3 }
 0x13a   :  { %423 = vmatmul.f32.gmra.mxu3 %v160_v14  ;;  %548 = vmatmul.f32.gmra.mxu1 %v89_v15 }
 0x13d   :  { %v376_v36 = vpop.f32.mrf.mxu3 }
 0x13e   :  { %v1528_v49 = vadd.f32 %v609_v16, %v376_v36  ;;  %v271_v30 = vpop.f32.mrf.mxu0  ;;  %v665_v36 = vmax.f32 %v460_v35, %v1426_v0  ;;  %v466_v0 = vadd.f32 %v1310_v31, %v1305_v29 }
 0x13f   :  { %v504_v54 = vpop.f32.mrf.mxu1  ;;  %v612_v58 = vpop.f32.mrf.mxu2 }
 0x140   :  { %v505_v3 = vadd.f32 %v504_v54, %v271_v30  ;;  %v463_v54 = vadd.f32 %v1292_v22, %v1287_v20  ;;  %v667_v20 = vmax.f32 %v466_v0, %v1458_v53 }
 0x142   :  { %v1533_v14 = vmax.f32 %v664_v9, %v505_v3  ;;  %551 = vmatmul.f32.gmra.mxu1 %v91_v38  ;;  %v666_v11 = vmax.f32 %v463_v54, %v1442_v24  ;;  %v445_v24 = vadd.f32 %v1184_v34, %v1179_v32  ;;  %v448_v32 = vadd.f32 %v1202_v41, %v1197_v39 }
 0x143   :  { %v451_v39 = vadd.f32 %v1220_v50, %v1215_v48  ;;  %v454_v48 = vadd.f32 %v1238_v59, %v1233_v57 }
 0x145   :  { %v379_v15 = vpop.f32.mrf.mxu3 }
 0x146   :  { %v1537_v37 = vadd.f32 %v612_v58, %v379_v15  ;;  %v274_v2 = vpop.f32.mrf.mxu0 }
 0x147   :  { %v507_v4 = vpop.f32.mrf.mxu1  ;;  %v615_v16 = vpop.f32.mrf.mxu2 }
 0x148   :  { %v508_v62 = vadd.f32 %v507_v4, %v274_v2 }
 0x14a   :  { %v1540_v42 = vmax.f32 %v665_v36, %v508_v62 }
 0x14d   :  { %v382_v27 = vpop.f32.mrf.mxu3 }
 0x14e   :  { %v1544_v30 = vadd.f32 %v615_v16, %v382_v27  ;;  %v277_v38 = vpop.f32.mrf.mxu0  ;;  %v469_v27 = vadd.f32 %v1328_v45, %v1323_v43  ;;  %v472_v43 = vadd.f32 %v1346_v60, %v1341_v55  ;;  %v475_v55 = vadd.f32 %v1364_v8, %v1359_v6 }
 0x14f   :  { %v510_v26 = vpop.f32.mrf.mxu1  ;;  %v618_v44 = vpop.f32.mrf.mxu2  ;;  %v478_v6 = vadd.f32 %v1382_v23, %v1377_v18 }
 0x150   :  { %v511_v13 = vadd.f32 %v510_v26, %v277_v38  ;;  %v660_v16 = vmax.f32 %v445_v24, %v469_v27  ;;  %v661_v26 = vmax.f32 %v448_v32, %v472_v43 }
 0x151   :  { %v663_v24 = vmax.f32 %v454_v48, %v478_v6 }
 0x152   :  { %v1547_v58 = vmax.f32 %v666_v11, %v511_v13  ;;  %v1563_v38 = vmax.f32 %v660_v16, %v1474_v21  ;;  %v1576_v21 = vmax.f32 %v661_v26, %v1490_v61 }
 0x155   :  { %v385_v9 = vpop.f32.mrf.mxu3 }
 0x156   :  { %v1551_v62 = vadd.f32 %v618_v44, %v385_v9  ;;  %v280_v3 = vpop.f32.mrf.mxu0 }
 0x157   :  { %v513_v15 = vpop.f32.mrf.mxu1  ;;  %v621_v35 = vpop.f32.mrf.mxu2 }
 0x158   :  { %v514_v22 = vadd.f32 %v513_v15, %v280_v3  ;;  %v662_v3 = vmax.f32 %v451_v39, %v475_v55 }
 0x15a   :  { %v1556_v2 = vmax.f32 %v667_v20, %v514_v22  ;;  %v1589_v61 = vmax.f32 %v662_v3, %v1506_v40  ;;  %v1604_v40 = vmax.f32 %v663_v24, %v1522_v25 }
 0x15d   :  { %v388_v4 = vpop.f32.mrf.mxu3 }
 0x15e   :  { %v1560_v36 = vadd.f32 %v621_v35, %v388_v4  ;;  %v283_v29 = vpop.f32.mrf.mxu0 }
 0x15f   :  { %v516_v31 = vpop.f32.mrf.mxu1  ;;  %v624_v54 = vpop.f32.mrf.mxu2 }
 0x160   :  { %v1565_v53 = vadd.f32 %v516_v31, %v283_v29 }
 0x162   :  { %v676_v45 = vmax.f32 %v1563_v38, %v1565_v53  ;;  %v592_v38 = vadd.f32 %v1424_v63, %v1431_v7  ;;  %v1709_v63 = vld [vmem:[#allocation6_spill] sm:$0xff] }
 0x165   :  { %v391_v34 = vpop.f32.mrf.mxu3 }
 0x166   :  { %v1573_v44 = vadd.f32 %v624_v54, %v391_v34  ;;  %v286_v11 = vpop.f32.mrf.mxu0 }
 0x167   :  { %v519_v13 = vpop.f32.mrf.mxu1  ;;  %v627_v9 = vpop.f32.mrf.mxu2 }
 0x168   :  { %v1578_v0 = vadd.f32 %v519_v13, %v286_v11 }
 0x16a   :  { %v677_v60 = vmax.f32 %v1576_v21, %v1578_v0 }
 0x16d   :  { %v394_v41 = vpop.f32.mrf.mxu3 }
 0x16e   :  { %v1586_v15 = vadd.f32 %v627_v9, %v394_v41  ;;  %v289_v35 = vpop.f32.mrf.mxu0 }
 0x16f   :  { %v522_v20 = vpop.f32.mrf.mxu1  ;;  %v630_v22 = vpop.f32.mrf.mxu2 }
 0x170   :  { %v1591_v27 = vadd.f32 %v522_v20, %v289_v35 }
 0x172   :  { %v678_v8 = vmax.f32 %v1589_v61, %v1591_v27 }
 0x175   :  { %v397_v50 = vpop.f32.mrf.mxu3 }
 0x176   :  { %v1599_v4 = vadd.f32 %v630_v22, %v397_v50  ;;  %v292_v16 = vpop.f32.mrf.mxu0 }
 0x177   :  { %v525_v29 = vpop.f32.mrf.mxu1  ;;  %v1601_v31 = vpop.f32.mrf.mxu2 }
 0x178   :  { %v1606_v54 = vadd.f32 %v525_v29, %v292_v16 }
 0x17a   :  { %v679_v18 = vmax.f32 %v1604_v40, %v1606_v54  ;;  %v1712_v54 = vld [vmem:[#allocation3_spill] sm:$0xff] }
 0x17d   :  { %v1610_v23 = vpop.f32.mrf.mxu3 }
 0x17e   :  { %v1612_v43 = vpop.f32.mrf.mxu0  ;;  %v634_v27 = vadd.f32 %v1601_v31, %v1610_v23  ;;  %v1713_v23 = vld [vmem:[#allocation5_spill] sm:$0xff] }
 0x17f   :  { %v1614_v57 = vpop.f32.mrf.mxu1  ;;  %v636_v59 = vpop.f32.mrf.mxu2 }
 0x185   :  { %v403_v32 = vpop.f32.mrf.mxu3 }
 0x186   :  { %v637_v34 = vadd.f32 %v636_v59, %v403_v32  ;;  %v298_v26 = vpop.f32.mrf.mxu0 }
 0x187   :  { %v531_v11 = vpop.f32.mrf.mxu1  ;;  %v639_v13 = vpop.f32.mrf.mxu2 }
 0x188   :  { %v532_v9 = vadd.f32 %v531_v11, %v298_v26 }
 0x18a   :  { %v681_v25 = vmax.f32 %v1540_v42, %v532_v9 }
 0x18c   :  { %v689_v55 = vmax.f32 %v681_v25, %v1213_v47 }
 0x18d   :  { %v406_v39 = vpop.f32.mrf.mxu3 }
 0x18e   :  { %v697_v41 = vmax.f32 %v689_v55, %v1357_v5  ;;  %v640_v3 = vadd.f32 %v639_v13, %v406_v39  ;;  %v301_v35 = vpop.f32.mrf.mxu0 }
 0x18f   :  { %v534_v20 = vpop.f32.mrf.mxu1  ;;  %v1619_v22 = vpop.f32.mrf.mxu2 }
 0x190   :  { %v535_v6 = vadd.f32 %v534_v20, %v301_v35  ;;  %v1622_v48 = vmax.f32 %v697_v41, %v1495_v12 }
 0x192   :  { %v682_v50 = vmax.f32 %v1547_v58, %v535_v6  ;;  %v713_v24 = vmax.f32 %v1622_v48, %v1586_v15  ;;  %v724_v15 = vld [vmem:[%s1700_s2] sm:$0xff] }
 0x194   :  { %v690_v42 = vmax.f32 %v682_v50, %v1231_v56 }
 0x195   :  { %v1628_v47 = vpop.f32.mrf.mxu3 }
 0x196   :  { %v698_v5 = vmax.f32 %v690_v42, %v1375_v17  ;;  %v304_v16 = vpop.f32.mrf.mxu0 }
 0x197   :  { %v537_v29 = vpop.f32.mrf.mxu1  ;;  %v1631_v59 = vpop.f32.mrf.mxu2 }
 0x198   :  { %v538_v32 = vadd.f32 %v537_v29, %v304_v16  ;;  %v706_v26 = vmax.f32 %v698_v5, %v1511_v52 }
 0x19a   :  { %v683_v12 = vmax.f32 %v1556_v2, %v538_v32  ;;  %v714_v58 = vmax.f32 %v706_v26, %v1599_v4  ;;  %v589_v2 = vadd.f32 %v1408_v46, %v1413_v51 }
 0x19c   :  { %v691_v11 = vmax.f32 %v683_v12, %v1249_v1  ;;  %v529_v12 = vadd.f32 %v1614_v57, %v1612_v43 }
 0x19d   :  { %v1637_v13 = vpop.f32.mrf.mxu3 }
 0x19e   :  { %v699_v56 = vmax.f32 %v691_v11, %v1393_v33  ;;  %v307_v9 = vpop.f32.mrf.mxu0 }
 0x19f   :  { %v540_v25 = vpop.f32.mrf.mxu1  ;;  %v648_v17 = vpop.f32.mrf.mxu2 }
 0x1a0   :  { %v541_v55 = vadd.f32 %v540_v25, %v307_v9  ;;  %v707_v39 = vmax.f32 %v699_v56, %v1528_v49  ;;  %v1711_v25 = vld [vmem:[#allocation7_spill] sm:$0xff] }
 0x1a2   :  { %v684_v52 = vmax.f32 %v676_v45, %v541_v55  ;;  %v715_v9 = vmax.f32 %v707_v39, %v634_v27 }
 0x1a4   :  { %v692_v4 = vmax.f32 %v684_v52, %v1267_v10 }
 0x1a5   :  { %v415_v1 = vpop.f32.mrf.mxu3 }
 0x1a6   :  { %v310_v41 = vpop.f32.mrf.mxu0  ;;  %v700_v35 = vmax.f32 %v692_v4, %v589_v2 }
 0x1a7   :  { %v543_v20 = vpop.f32.mrf.mxu1  ;;  %v651_v33 = vpop.f32.mrf.mxu2 }
 0x1a8   :  { %v544_v6 = vadd.f32 %v543_v20, %v310_v41  ;;  %v708_v50 = vmax.f32 %v700_v35, %v1537_v37  ;;  %v1714_v41 = vld [vmem:[#allocation8_spill] sm:$0xff]  ;;  %v649_v35 = vadd.f32 %v648_v17, %v415_v1 }
 0x1aa   :  { %v685_v49 = vmax.f32 %v677_v60, %v544_v6  ;;  %v716_v42 = vmax.f32 %v708_v50, %v637_v34 }
 0x1ac   :  { %v693_v46 = vmax.f32 %v685_v49, %v1285_v19 }
 0x1ad   :  { %v418_v51 = vpop.f32.mrf.mxu3 }
 0x1ae   :  { %v313_v10 = vpop.f32.mrf.mxu0  ;;  %v701_v53 = vmax.f32 %v693_v46, %v592_v38  ;;  %v652_v40 = vadd.f32 %v651_v33, %v418_v51  ;;  %v646_v33 = vadd.f32 %v1631_v59, %v1637_v13 }
 0x1af   :  { %v546_v45 = vpop.f32.mrf.mxu1  ;;  %v654_v29 = vpop.f32.mrf.mxu2 }
 0x1b0   :  { %v547_v5 = vadd.f32 %v546_v45, %v313_v10  ;;  %v709_v16 = vmax.f32 %v701_v53, %v1544_v30  ;;  %v721_v39 = vmax.f32 %v713_v24, %v652_v40 }
 0x1b2   :  { %v686_v37 = vmax.f32 %v678_v8, %v547_v5  ;;  %v717_v21 = vmax.f32 %v709_v16, %v640_v3 }
 0x1b4   :  { %v694_v0 = vmax.f32 %v686_v37, %v1303_v28  ;;  %v1710_v28 = vld [vmem:[#allocation4_spill] sm:$0xff] }
 0x1b5   :  { %v421_v60 = vpop.f32.mrf.mxu3 }
 0x1b6   :  { %v316_v34 = vpop.f32.mrf.mxu0  ;;  %v702_v7 = vmax.f32 %v694_v0, %v1709_v63  ;;  %v655_v11 = vadd.f32 %v654_v29, %v421_v60 }
 0x1b7   :  { %v549_v19 = vpop.f32.mrf.mxu1  ;;  %v657_v61 = vpop.f32.mrf.mxu2 }
 0x1b8   :  { %v550_v32 = vadd.f32 %v549_v19, %v316_v34  ;;  %v710_v26 = vmax.f32 %v702_v7, %v1551_v62  ;;  %v680_v62 = vmax.f32 %v1533_v14, %v529_v12  ;;  %v722_v31 = vmax.f32 %v714_v58, %v655_v11 }
 0x1b9   :  { %v643_v58 = vadd.f32 %v1619_v22, %v1628_v47  ;;  %v727_v22 = vstv %s1701_s3 }
 0x1ba   :  { %v687_v30 = vmax.f32 %v679_v18, %v550_v32 }
 0x1bb   :  { %v718_v50 = vmax.f32 %v710_v26, %v643_v58 }
 0x1bc   :  { %v695_v8 = vmax.f32 %v687_v30, %v1710_v28 }
 0x1bd   :  { %v424_v3 = vpop.f32.mrf.mxu3 }
 0x1be   :  { %v658_v56 = vadd.f32 %v657_v61, %v424_v3  ;;  %v703_v55 = vmax.f32 %v695_v8, %v1711_v25 }
 0x1bf   :  { %v552_v52 = vpop.f32.mrf.mxu1 }
 0x1c0   :  { %v553_v18 = vadd.f32 %v552_v52, %v1712_v54  ;;  %v723_v2 = vmax.f32 %v715_v9, %v658_v56  ;;  %v711_v43 = vmax.f32 %v703_v55, %v1560_v36 }
 0x1c2   :  { %v688_v57 = vmax.f32 %v680_v62, %v553_v18  ;;  %743 = vmatpush.msrb.mxu2 %v723_v2  ;;  %v719_v6 = vmax.f32 %v711_v43, %v646_v33  ;;  %v865_v2 = vmov -1.0  }
 0x1c4   :  { %v696_v4 = vmax.f32 %v688_v57, %v1713_v23  ;;  %744 = vmatpush.msrb.mxu2 %v722_v31 }
 0x1c6   :  { %745 = vmatpush.msrb.mxu2 %v721_v39  ;;  %v704_v14 = vmax.f32 %v696_v4, %v1714_v41 }
 0x1c8   :  { %v712_v20 = vmax.f32 %v704_v14, %v1573_v44  ;;  %v725_v44 = vld [vmem:[%s1700_s2 + $0x8] sm:$0xff] }
 0x1ca   :  { %v720_v36 = vmax.f32 %v712_v20, %v649_v35 }
 0x1cc   :  { %746 = vmatpush.msrb.mxu2 %v720_v36 }
 0x1ce   :  { %747 = vmatpush.msrb.mxu2 %v719_v6 }
 0x1d0   :  { %748 = vmatpush.msrb.mxu2 %v718_v50 }
 0x1d2   :  { %749 = vmatpush.msrb.mxu2 %v717_v21 }
 0x1d4   :  { %750 = vmatpush.msrb.mxu2 %v716_v42 }
 0x1d5   :  { %822 = vmatmul.msk.f32.vlgmr.msrb.gmra.mxu2 %vm728_vm0, %v724_v15 }
 0x1dd   :  { %823 = vmatmul.msk.f32.gmra.mxu2 %vm728_vm0, %v725_v44 }
 0x258   :  { %v752_v48 = vpop.f32.mrf.mxu2 }
 0x259   :  { %v753_v24 = vadd.f32 %v752_v48, %v727_v22 }
 0x25b   :  { %v760_v47 = vmul.f32 0.70710677, %v753_v24  ;;  %v758_v23 = vmul.f32 0.5, %v753_v24 }
 0x25d   :  { %v766_v59 = vand.u32 2147483647, %v760_v47  ;;  %vm762_vm1 = vcmp.ge.f32.partialorder %v760_v47, 0.0 }
 0x25e   :  { %v764_v43 = vsel %vm762_vm1, 1.0, %v865_v2 }
 0x25f   :  { %v768_v13 = vmul.f32 0.3275911, %v766_v59  ;;  %v798_v16 = vsub.f32 0.0, %v766_v59 }
 0x260   :  { %v755_v17 = vpop.f32.mrf.mxu2 }
 0x261   :  { %v770_v1 = vadd.f32 1.0, %v768_v13  ;;  %v756_v49 = vadd.f32 %v755_v17, %v727_v22  ;;  %v800_v60 = vmul.f32 %v798_v16, %v766_v59 }
 0x263   :  { %857 = vrcp.f32 %v770_v1  ;;  %v761_v42 = vmul.f32 0.70710677, %v756_v49  ;;  %v802_v32 = vmul.f32 1.442695, %v800_v60  ;;  %v759_v58 = vmul.f32 0.5, %v756_v49 }
 0x265   :  { %v767_v38 = vand.u32 2147483647, %v761_v42  ;;  %vm763_vm2 = vcmp.ge.f32.partialorder %v761_v42, 0.0 }
 0x266   :  { %v765_v33 = vsel %vm763_vm2, 1.0, %v865_v2 }
 0x267   :  { %v769_v46 = vmul.f32 0.3275911, %v767_v38  ;;  %v799_v26 = vsub.f32 0.0, %v767_v38 }
 0x269   :  { %v858_v51 = vpop.eup %857  ;;  %v771_v10 = vadd.f32 1.0, %v769_v46  ;;  %v801_v28 = vmul.f32 %v799_v26, %v767_v38 }
 0x26a   :  { %v774_v53 = vmul.f32 %v858_v51, %v770_v1 }
 0x26b   :  { %859 = vrcp.f32 %v771_v10  ;;  %v804_v9 = vmul.f32 1.442695, %v801_v28 }
 0x26c   :  { %v776_v45 = vsub.f32 2.0, %v774_v53  ;;  %861 = vpow2.f32 %v802_v32 }
 0x26d   :  { %863 = vpow2.f32 %v804_v9 }
 0x26e   :  { %v778_v5 = vmul.f32 %v858_v51, %v776_v45 }
 0x270   :  { %v780_v29 = vmul.f32 1.0614054, %v778_v5 }
 0x271   :  { %v860_v37 = vpop.eup %859 }
 0x272   :  { %v782_v21 = vadd.f32 -1.4531521, %v780_v29  ;;  %v775_v0 = vmul.f32 %v860_v37, %v771_v10  ;;  %v862_v62 = vpop.eup %861 }
 0x273   :  { %v864_v41 = vpop.eup %863 }
 0x274   :  { %v784_v34 = vmul.f32 %v782_v21, %v778_v5  ;;  %v777_v63 = vsub.f32 2.0, %v775_v0 }
 0x276   :  { %v786_v7 = vadd.f32 1.4214138, %v784_v34  ;;  %v779_v19 = vmul.f32 %v860_v37, %v777_v63 }
 0x278   :  { %v788_v30 = vmul.f32 %v786_v7, %v778_v5  ;;  %v781_v12 = vmul.f32 1.0614054, %v779_v19 }
 0x27a   :  { %v790_v61 = vadd.f32 -0.28449672, %v788_v30  ;;  %v783_v27 = vadd.f32 -1.4531521, %v781_v12 }
 0x27c   :  { %v792_v8 = vmul.f32 %v790_v61, %v778_v5  ;;  %v785_v3 = vmul.f32 %v783_v27, %v779_v19 }
 0x27e   :  { %v794_v11 = vadd.f32 0.2548296, %v792_v8  ;;  %v787_v56 = vadd.f32 1.4214138, %v785_v3 }
 0x280   :  { %v796_v25 = vmul.f32 %v794_v11, %v778_v5  ;;  %v789_v55 = vmul.f32 %v787_v56, %v779_v19 }
 0x282   :  { %v806_v52 = vmul.f32 %v862_v62, %v796_v25  ;;  %v791_v40 = vadd.f32 -0.28449672, %v789_v55 }
 0x284   :  { %v808_v54 = vsub.f32 1.0, %v806_v52  ;;  %v793_v18 = vmul.f32 %v791_v40, %v779_v19 }
 0x286   :  { %v810_v57 = vmul.f32 %v808_v54, %v764_v43  ;;  %v795_v31 = vadd.f32 0.2548296, %v793_v18 }
 0x288   :  { %v812_v4 = vadd.f32 1.0, %v810_v57  ;;  %v797_v39 = vmul.f32 %v795_v31, %v779_v19 }
 0x28a   :  { %v814_v14 = vmul.f32 %v812_v4, %v758_v23  ;;  %v807_v35 = vmul.f32 %v864_v41, %v797_v39 }
 0x28c   :  { %816 = vst [vmem:[%s1702_s4] sm:$0xff] %v814_v14  ;;  %v809_v20 = vsub.f32 1.0, %v807_v35 }
 0x28e   :  { %v811_v36 = vmul.f32 %v809_v20, %v765_v33 }
 0x290   :  { %v813_v6 = vadd.f32 1.0, %v811_v36 }
 0x292   :  { %v815_v50 = vmul.f32 %v813_v6, %v759_v58 }
 0x294   :  { %817 = vst [vmem:[%s1702_s4 + $0x8] sm:$0xff] %v815_v50 }

</bundles_post_ra>
